<compile_context>
chip_gen: v5e
topology: v5e:2x2
jax: 0.10.0
libtpu: 0.0.40
codegen_flags: <defaults>
</compile_context>

<pallas_src>
import functools

import jax
import jax.numpy as jnp
from jax.experimental import pallas as pl
from jax.experimental.pallas import tpu as pltpu


def _split_kernel_flat(x_ref, s0_ref, s1_ref, s2_ref, *, hw):
    # x_ref: (TN, 3*HW) lane-dense block; outputs: (TN, HW) each.
    # Stores come directly from 128-aligned lane slices of the input ref.
    s0_ref[...] = x_ref[:, 0 * hw:1 * hw]
    s1_ref[...] = x_ref[:, 1 * hw:2 * hw]
    s2_ref[...] = x_ref[:, 2 * hw:3 * hw]


def _split_kernel_3d(x_ref, s0_ref, s1_ref, s2_ref):
    # Fallback layout when HW is not a multiple of 128.
    # x_ref: (TN, 3, HW); outputs: (TN, HW).
    s0_ref[...] = x_ref[:, 0, :]
    s1_ref[...] = x_ref[:, 1, :]
    s2_ref[...] = x_ref[:, 2, :]


def _sublane_align(itemsize):
    # Packed-sublane granularity: 8 rows per vreg tile for 32-bit,
    # 16 for 16-bit, 32 for 8-bit dtypes.
    return {4: 8, 2: 16, 1: 32}.get(itemsize, 8)


def _choose_tn(N, row_bytes, align, vmem_budget=8 * 1024 * 1024):
    """Pick a batch tile from the true double-buffered VMEM footprint."""
    # Each grid step keeps 2 buffers (double-buffering) of (input + 3 outputs).
    tn = vmem_budget // (2 * max(row_bytes, 1))
    tn = max(align, (tn // align) * align)
    if tn >= N:
        if N >= 2 * align:
            # Whole batch would fit one step; split into >= 2 "parallel" steps
            # so both TensorCores get work on v7x (and megacore on v5e/v6e).
            half = -(-N // 2)                      # ceil(N / 2)
            tn = -(-half // align) * align         # round up to alignment
            tn = min(tn, N)
        else:
            tn = N                                 # tiny batch: single step
    return tn


def split_cat(v1, *, force_pallas=False):
    """Pallas implementation of Model.forward.

    Returns (concatenated_tensor, (split0, split1, split2)).
    concatenated_tensor == v1 bitwise, so v1 is returned directly.
    """
    N, C, H, W = v1.shape
    assert C == 3, "split sizes [1,1,1] on dim=1 require 3 channels"
    dtype = v1.dtype
    itemsize = jnp.dtype(dtype).itemsize
    HW = H * W
    total_bytes = N * C * HW * itemsize

    # Tiny-input fast path: pallas launch/step overhead dominates; plain XLA
    # slices are strictly cheaper below a few hundred KiB.
    if not force_pallas and total_bytes < 256 * 1024:
        splits = tuple(v1[:, i:i + 1] for i in range(3))
        return v1, splits

    align = _sublane_align(itemsize)
    use_flat = (HW % 128 == 0)

    if use_flat:
        # Lane-dense: channel dim folded into the lane axis.
        x2 = v1.reshape(N, C * HW)
        row_bytes = (C * HW + 3 * HW) * itemsize          # input + 3 outputs
        tn = _choose_tn(N, row_bytes, align)
        in_spec = pl.BlockSpec((tn, C * HW), lambda n: (n, 0))
        kernel = functools.partial(_split_kernel_flat, hw=HW)
    else:
        # Fallback: (N, C, HW) blocks; C=3 pads to 8 sublanes in VMEM —
        # account for that padding when sizing the tile.
        x2 = v1.reshape(N, C, HW)
        hw_pad = -(-HW // 128) * 128
        row_bytes = (8 * hw_pad + 3 * hw_pad) * itemsize  # padded in + 3 outs
        tn = _choose_tn(N, row_bytes, align)
        in_spec = pl.BlockSpec((tn, C, HW), lambda n: (n, 0, 0))
        kernel = _split_kernel_3d

    grid = (pl.cdiv(N, tn),)
    out_spec = pl.BlockSpec((tn, HW), lambda n: (n, 0))
    out_shape = tuple(jax.ShapeDtypeStruct((N, HW), dtype) for _ in range(3))

    s0, s1, s2 = pl.pallas_call(
        kernel,
        out_shape=out_shape,
        grid=grid,
        in_specs=[in_spec],
        out_specs=[out_spec, out_spec, out_spec],
        compiler_params=pltpu.CompilerParams(
            dimension_semantics=("parallel",),
        ),
        cost_estimate=pl.CostEstimate(
            flops=0,
            transcendentals=0,
            bytes_accessed=2 * N * C * HW * itemsize,   # read all + write all
        ),
    )(x2)

    splits = tuple(s.reshape(N, 1, H, W) for s in (s0, s1, s2))
    # cat(split(v1)) == v1 — return the input directly (no redundant copy).
    return v1, splits


def _check(x, cat, splits):
    N, C, H, W = x.shape
    ref_splits = tuple(x[:, i:i + 1] for i in range(3))
    ref_cat = jnp.concatenate(ref_splits, axis=1)
    assert cat.shape == x.shape and cat.dtype == x.dtype
    assert all(s.shape == (N, 1, H, W) for s in splits)
    assert jnp.array_equal(cat, ref_cat)
    assert all(jnp.array_equal(a, b) for a, b in zip(splits, ref_splits))


if __name__ == "__main__":
    key = jax.random.PRNGKey(0)
    # Input consistent with split([1,1,1], dim=1): 3 channels.
    x = jax.random.normal(key, (2, 3, 16, 16), dtype=jnp.float32)

    # (a) Default path: tiny input takes the no-Pallas fast path.
    cat_a, splits_a = split_cat(x)
    # (b) Force the Pallas kernel (flattened lane-dense layout, HW=256).
    cat_b, splits_b = split_cat(x, force_pallas=True)
    # (c) Force the 3D fallback layout (HW=64, not a multiple of 128).
    x_c = jax.random.normal(jax.random.PRNGKey(1), (4, 3, 8, 8),
                            dtype=jnp.float32)
    cat_c, splits_c = split_cat(x_c, force_pallas=True)

    jax.block_until_ready((cat_a, splits_a, cat_b, splits_b, cat_c, splits_c))

    _check(x, cat_a, splits_a)
    _check(x, cat_b, splits_b)
    _check(x_c, cat_c, splits_c)

    print("KERNEL_OK")
</pallas_src>

<mosaic_0001>
module attributes {stable_mosaic.version = 11 : i64} {
  func.func @_split_kernel_flat(%arg0: i32, %arg1: memref<2x768xf32, #tpu.memory_space<vmem>>, %arg2: memref<2x256xf32, #tpu.memory_space<vmem>>, %arg3: memref<2x256xf32, #tpu.memory_space<vmem>>, %arg4: memref<2x256xf32, #tpu.memory_space<vmem>>) attributes {dimension_semantics = [#tpu.dimension_semantics<parallel>], iteration_bounds = array<i64: 1>, scalar_prefetch = 0 : i64, scratch_operands = 0 : i64, tpu.core_type = #tpu.core_type<tc>, window_params = [{transform_indices = @transform_0, window_bounds = array<i64: 2, 768>}, {transform_indices = @transform_1, window_bounds = array<i64: 2, 256>}, {transform_indices = @transform_2, window_bounds = array<i64: 2, 256>}, {transform_indices = @transform_3, window_bounds = array<i64: 2, 256>}]} {
    %c0 = arith.constant 0 : index
    %c0_0 = arith.constant 0 : index
    %0 = vector.load %arg1[%c0, %c0_0] : memref<2x768xf32, #tpu.memory_space<vmem>>, vector<2x256xf32>
    %c0_1 = arith.constant 0 : index
    %c0_2 = arith.constant 0 : index
    %1 = vector.load %arg2[%c0_1, %c0_2] : memref<2x256xf32, #tpu.memory_space<vmem>>, vector<2x256xf32>
    tpu.vector_store %arg2[%c0_1, %c0_2], %0 {strides = array<i32>} : memref<2x256xf32, #tpu.memory_space<vmem>>, vector<2x256xf32>,
    %c0_3 = arith.constant 0 : index
    %c256 = arith.constant 256 : index
    %2 = vector.load %arg1[%c0_3, %c256] : memref<2x768xf32, #tpu.memory_space<vmem>>, vector<2x256xf32>
    %c0_4 = arith.constant 0 : index
    %c0_5 = arith.constant 0 : index
    %3 = vector.load %arg3[%c0_4, %c0_5] : memref<2x256xf32, #tpu.memory_space<vmem>>, vector<2x256xf32>
    tpu.vector_store %arg3[%c0_4, %c0_5], %2 {strides = array<i32>} : memref<2x256xf32, #tpu.memory_space<vmem>>, vector<2x256xf32>,
    %c0_6 = arith.constant 0 : index
    %c512 = arith.constant 512 : index
    %4 = vector.load %arg1[%c0_6, %c512] : memref<2x768xf32, #tpu.memory_space<vmem>>, vector<2x256xf32>
    %c0_7 = arith.constant 0 : index
    %c0_8 = arith.constant 0 : index
    %5 = vector.load %arg4[%c0_7, %c0_8] : memref<2x256xf32, #tpu.memory_space<vmem>>, vector<2x256xf32>
    tpu.vector_store %arg4[%c0_7, %c0_8], %4 {strides = array<i32>} : memref<2x256xf32, #tpu.memory_space<vmem>>, vector<2x256xf32>,
    return
  }
  func.func @transform_0(%arg0: i32) -> (i32, i32) {
    %c0_i32 = arith.constant 0 : i32
    %c0_i32_0 = arith.constant 0 : i32
    return %arg0, %c0_i32 : i32, i32
  }
  func.func @transform_1(%arg0: i32) -> (i32, i32) {
    %c0_i32 = arith.constant 0 : i32
    %c0_i32_0 = arith.constant 0 : i32
    return %arg0, %c0_i32 : i32, i32
  }
  func.func @transform_2(%arg0: i32) -> (i32, i32) {
    %c0_i32 = arith.constant 0 : i32
    %c0_i32_0 = arith.constant 0 : i32
    return %arg0, %c0_i32 : i32, i32
  }
  func.func @transform_3(%arg0: i32) -> (i32, i32) {
    %c0_i32 = arith.constant 0 : i32
    %c0_i32_0 = arith.constant 0 : i32
    return %arg0, %c0_i32 : i32, i32
  }
}

</mosaic_0001>

<bundles_post_ra>
// kernel: tpu_custom_call.1
= control target key start
LH: loop header
LB: loop body
LE: loop exit
PB: predicated region body
PF: predicated region fallthrough
CT: control target
= control target key end

     0   :  { %9 = vsyncpa [#allocation3], 0  ;;  %s223_s0 = inlined_call_operand.hbm [shape: f32[2,768], index: 0, kind: input, shape index: {}]   ;;  %s224_s1 = inlined_call_operand.hbm [shape: f32[2,256], index: 1, kind: output, shape index: {0}]   ;;  %s225_s2 = inlined_call_operand.hbm [shape: f32[2,256], index: 2, kind: output, shape index: {1}]   ;;  %s226_s3 = inlined_call_operand.hbm [shape: f32[2,256], index: 3, kind: output, shape index: {2}]  }
   0x1   :  { %10 = vsyncpa [#allocation4], 0 }
   0x2   :  { %11 = vsyncpa [#allocation7], 0  ;;  %s17_s14 = sshll.u32 %s223_s0, 4  ;;  %s187_s15 = smov [#allocation2]   ;;  %s18_s14 = int_to_ptr.hbm [resolvable:$true] %s17_s14 }
   0x3   :  { %s19_s16 = sshll.u32 %s187_s15, 4  ;;  %s20_s16 = int_to_ptr.vmem [resolvable:$true] %s19_s16 }
   0x4   :  { %22 = dma.hbm_to_vmem [thread:$0]  %s18_s14, 192, %s20_s16, [#allocation3]  }
   0x5   :  { %181 = dma.done.wait [#allocation3], 192  }
   0x6   :  { %182 = vsyncadd [#allocation3], 4294967104  ;;  %s51_s19 = sshll.u32 %s225_s2, 4  ;;  %s188_s20 = smov [#allocation6]   ;;  %v29_v0 = vld [vmem:[#allocation2 + $0x4] sm:$0xf]  ;;  %s52_s19 = int_to_ptr.hbm [resolvable:$true] %s51_s19 }
   0x7   :  { %s49_s21 = sshll.u32 %s188_s20, 4  ;;  %s189_s22 = smov [#allocation5]   ;;  %v27_v1 = vld [vmem:[#allocation2] sm:$0xf]  ;;  %v31_v2 = vld [vmem:[#allocation2 + $0x8] sm:$0xf]  ;;  %s50_s21 = int_to_ptr.vmem [resolvable:$true] %s49_s21 }
   0x8   :  { %s38_s23 = sshll.u32 %s189_s22, 4  ;;  %s40_s0 = sshll.u32 %s224_s1, 4  ;;  %30 = vst [vmem:[#allocation6] sm:$0xf] %v29_v0  ;;  %s39_s23 = int_to_ptr.vmem [resolvable:$true] %s38_s23  ;;  %s41_s0 = int_to_ptr.hbm [resolvable:$true] %s40_s0 }
   0x9   :  { %s62_s28 = sshll.u32 %s226_s3, 4  ;;  %s190_s29 = smov [#allocation8]   ;;  %28 = vst [vmem:[#allocation5] sm:$0xf] %v27_v1  ;;  %s63_s28 = int_to_ptr.hbm [resolvable:$true] %s62_s28 }
   0xa   :  { %s60_s30 = sshll.u32 %s190_s29, 4  ;;  %32 = vst [vmem:[#allocation8] sm:$0xf] %v31_v2  ;;  %s61_s30 = int_to_ptr.vmem [resolvable:$true] %s60_s30 }
   0xb   :  { %54 = dma.vmem_to_hbm [thread:$0]  %s50_s21, 64, %s52_s19, [#allocation7]  }
   0xc   :  { %43 = dma.vmem_to_hbm [thread:$0]  %s39_s23, 64, %s41_s0, [#allocation4]  }
   0xd   :  { %65 = dma.vmem_to_hbm [thread:$0]  %s61_s30, 64, %s63_s28, [#allocation7]  }
   0xe   :  { %183 = dma.done.wait [#allocation4], 64  }
   0xf   :  { %184 = vsyncadd [#allocation4], 4294967232 }
  0x10   :  { %185 = dma.done.wait [#allocation7], 128  }
  0x11   :  { %186 = vsyncadd [#allocation7], 4294967168 }
  0x12   :  { %78 = vsyncpa [#allocation3], 1 }
  0x13   :  { %79 = vsyncpa [#allocation4], 1 }
  0x14   :  { %80 = vsyncpa [#allocation7], 1 }

</bundles_post_ra>
